<compile_context>
chip_gen: v7x
topology: tpu7x:2x2x1
jax: 0.10.0
libtpu: 0.0.40
codegen_flags: <defaults>
</compile_context>

<pallas_src>
import math

import numpy as np
import jax
import jax.numpy as jnp
from jax.experimental import pallas as pl
from jax.experimental.pallas import tpu as pltpu


_N_PAR = 11  # parameter planes per layer, see _build_param_stack


# --------------------------------------------------------------------- plain-JAX glue

def squeeze_nhwc(x):
    """Glow-style space-to-depth in NHWC: [B,H,W,C] -> [B,H/2,W/2,4C]. logdet = 0."""
    B, H, W, C = x.shape
    x = x.reshape(B, H // 2, 2, W // 2, 2, C)
    x = jnp.transpose(x, (0, 1, 3, 5, 2, 4))          # (B, H/2, W/2, C, 2, 2)
    return x.reshape(B, H // 2, W // 2, 4 * C)


def entry_transform(x_nchw, n_squeeze):
    """(x - 0.5) and NCHW->NHWC, with the FIRST Glow squeeze folded into the same
    transpose: one XLA copy instead of two tiny transpose kernels."""
    x = x_nchw - 0.5
    B, C, H, W = x.shape
    if n_squeeze == 0:
        return jnp.transpose(x, (0, 2, 3, 1))
    x = x.reshape(B, C, H // 2, 2, W // 2, 2)
    x = jnp.transpose(x, (0, 2, 4, 1, 3, 5))          # (B, H/2, W/2, C, 2, 2)
    x = x.reshape(B, H // 2, W // 2, 4 * C)
    for _ in range(n_squeeze - 1):                    # rare: >1 squeeze before layer 0
        x = squeeze_nhwc(x)
    return x


# --------------------------------------------------------------------- device helpers

_TC_CACHE = None


def _num_tensorcores():
    """TensorCores the grid can be sharded over via dimension_semantics='parallel'."""
    global _TC_CACHE
    if _TC_CACHE is None:
        n = 1
        try:
            kind = jax.devices()[0].device_kind.lower()
            if any(t in kind for t in ("v7", "7x")):
                n = 2                                  # v7x: 2 TCs per chip
            elif ("v4" in kind) or ("v5p" in kind):
                n = 2                                  # megacore
        except Exception:
            n = 1
        _TC_CACHE = n
    return _TC_CACHE


def _pick_num_blocks(B, H, WC):
    """One block per TensorCore when possible; split further only for very large
    batches so a single activation block stays comfortably small."""
    n_tc = _num_tensorcores()
    n_blk = n_tc if (B % n_tc == 0) else 1
    max_samples = max(1, (2 << 20) // (H * WC * 4))
    while (B // n_blk) > max_samples and B % (2 * n_blk) == 0:
        n_blk *= 2
    return n_blk


def _vmem_limit_bytes(B_blk, H, WC, ks):
    """Size the scoped-VMEM limit from the actual resident set (+headroom)."""
    L = len(ks)
    blk = B_blk * H * WC * 4                          # one f32 activation block
    par = L * _N_PAR * H * WC * 4                     # fused f32 parameter planes
    wts = sum(k * WC * WC * 2 for k in ks)            # bf16 block-circulant weights
    resident = 2 * (2 * blk + par + wts + 4096)       # double-buffered in/out + consts
    limit = 2 * resident + (2 << 20)                  # headroom for temporaries/scratch
    return int(min(max(limit, 4 << 20), 48 << 20))


# --------------------------------------------------------------------- Pallas kernel

def _croll_h(x, shift):
    """Circular roll by `shift` along axis=1 (the per-sample H axis) of a
    (B_blk, H, WC) block.  Static-slice form of a sublane rotate; at (*,8,128)
    this is a handful of vreg moves."""
    if shift == 0:
        return x
    return jnp.concatenate([x[:, -shift:, :], x[:, :-shift, :]], axis=1)


def _make_chunk_kernel(ks, H, WC, B_blk, with_logpdf):
    """Fused kernel for a run of layers sharing the same (H, W*C):
    per layer: actnorm -> interp -> PReLU -> circular conv (ONE matmul) -> PReLU -> interp.
    Emits y, per-sample PReLU logdet, and (optionally) per-sample Gaussian log-pdf."""
    n_layers = len(ks)

    def kernel(*refs):
        x_ref, par_ref = refs[0], refs[1]
        w_refs = refs[2:2 + n_layers]
        y_ref = refs[2 + n_layers]
        ld_ref = refs[3 + n_layers]
        lp_ref = refs[4 + n_layers] if with_logpdf else None

        def P(l, j):                                   # (H, WC) parameter plane
            return par_ref[l * _N_PAR + j]

        h = x_ref[...].astype(jnp.float32)             # (B_blk, H, WC), lane-dense
        ld = jnp.zeros((B_blk, H, WC), jnp.float32)    # PReLU logdet accumulator

        for l in range(n_layers):
            k = ks[l]
            c0 = k // 2
            # Actnorm (spatial): exp(log_scale) precomputed on host.
            h = P(l, 0) * h + P(l, 1)
            # Pre AffineInterpolate: s = sigmoid(pre) and (1-s)*b precomputed.
            h = P(l, 2) * h + P(l, 3)
            # Pre PReLU (spatial); log(alpha) precomputed.
            neg = h < 0.0
            ld = ld + jnp.where(neg, P(l, 5), 0.0)
            h = jnp.where(neg, P(l, 4) * h, h)

            # Circular conv as ONE MXU matmul over M = B_blk*H rows: the k
            # per-sample H-rolled copies are concatenated along lanes and
            # contracted with the host-built block-circulant weight (k*WC, WC).
            rolled = []
            for da in range(k):
                rolled.append(_croll_h(h, (c0 - da) % H))
            lhs = jnp.concatenate(rolled, axis=-1)      # (B_blk, H, k*WC) f32
            lhs = lhs.astype(jnp.bfloat16)              # cast only right before the dot
            lhs = lhs.reshape(B_blk * H, k * WC)        # H==8 -> tile-aligned merge
            conv = jnp.dot(lhs, w_refs[l][...],
                           preferred_element_type=jnp.float32)
            h = conv.reshape(B_blk, H, WC) + P(l, 6)    # spatial conv bias

            # Post PReLU
            neg = h < 0.0
            ld = ld + jnp.where(neg, P(l, 8), 0.0)
            h = jnp.where(neg, P(l, 7) * h, h)
            # Post AffineInterpolate
            h = P(l, 9) * h + P(l, 10)

        y_ref[...] = h.astype(y_ref.dtype)
        # Per-sample PReLU logdet fully reduced in-kernel (lane then sublane).
        ld_ref[...] = ld.sum(axis=2, keepdims=True).sum(axis=1, keepdims=True)
        if with_logpdf:
            sq = (h * h).sum(axis=2, keepdims=True).sum(axis=1, keepdims=True)
            lp_ref[...] = (-0.5 * math.log(2.0 * math.pi)) * (H * WC) - 0.5 * sq

    return kernel


def run_chunk(x_nhwc, chunk, with_logpdf):
    """Apply a fused run of layers. x_nhwc: [B,H,W,C] -> (y, prelu_logdet[B], logpdf[B]?)."""
    B, H, W, C = x_nhwc.shape
    WC = W * C
    ks = chunk['ks']
    L = len(ks)
    x2 = x_nhwc.reshape(B, H, WC)                      # lane-dense slab

    n_blk = _pick_num_blocks(B, H, WC)
    B_blk = B // n_blk

    flops = int(B * sum(2 * H * (k * WC) * WC + 16 * H * WC for k in ks))
    bytes_accessed = int(4 * 2 * B * H * WC                            # x in + y out
                         + n_blk * (4 * L * _N_PAR * H * WC            # params / step
                                    + 2 * sum(k * WC * WC for k in ks))  # bf16 weights
                         + 4 * 3 * B)                                  # tiny outputs

    out_shape = [jax.ShapeDtypeStruct((B, H, WC), jnp.float32),
                 jax.ShapeDtypeStruct((B, 1, 1), jnp.float32)]
    out_specs = [pl.BlockSpec((B_blk, H, WC), lambda b: (b, 0, 0)),
                 pl.BlockSpec((B_blk, 1, 1), lambda b: (b, 0, 0))]
    if with_logpdf:
        out_shape.append(jax.ShapeDtypeStruct((B, 1, 1), jnp.float32))
        out_specs.append(pl.BlockSpec((B_blk, 1, 1), lambda b: (b, 0, 0)))

    in_specs = [pl.BlockSpec((B_blk, H, WC), lambda b: (b, 0, 0)),          # x
                pl.BlockSpec((L * _N_PAR, H, WC), lambda b: (0, 0, 0))]     # params
    in_specs += [pl.BlockSpec((k * WC, WC), lambda b: (0, 0)) for k in ks]  # weights

    outs = pl.pallas_call(
        _make_chunk_kernel(tuple(ks), H, WC, B_blk, with_logpdf),
        out_shape=tuple(out_shape),
        grid_spec=pltpu.PrefetchScalarGridSpec(
            num_scalar_prefetch=0, grid=(n_blk,),
            in_specs=in_specs, out_specs=tuple(out_specs)),
        compiler_params=pltpu.CompilerParams(
            dimension_semantics=("parallel",),      # batch blocks across TCs on v7x
            vmem_limit_bytes=_vmem_limit_bytes(B_blk, H, WC, ks)),
        cost_estimate=pl.CostEstimate(flops=flops, transcendentals=0,
                                      bytes_accessed=bytes_accessed),
    )(x2, chunk['par_stack'], *chunk['conv_ws'])

    y = outs[0].reshape(B, H, W, C)
    ld = outs[1].reshape(B)
    lp = outs[2].reshape(B) if with_logpdf else None
    return y, ld, lp


# --------------------------------------------------------------------- parameters

def _init_raw_params(key, C, N, k):
    ks = jax.random.split(key, 10)
    p = {}
    p['an_ls'] = 0.05 * jax.random.normal(ks[0], (N, N, C), jnp.float32)
    p['an_b'] = 0.05 * jax.random.normal(ks[1], (N, N, C), jnp.float32)
    p['pi_s'] = 2.0 + 0.1 * jax.random.normal(ks[2], (N, N, C), jnp.float32)
    p['pi_b'] = 0.05 * jax.random.normal(ks[3], (N, N, C), jnp.float32)
    p['pn_a'] = jnp.exp(-0.2 + 0.05 * jax.random.normal(ks[4], (N, N, C), jnp.float32))
    # conv kernel: 'I + he_uniform' (OIHW, like torch)
    fan_in = C * k * k
    bound = math.sqrt(6.0 / fan_in)
    K = jax.random.uniform(ks[5], (C, C, k, k), jnp.float32, -bound, bound)
    K = K.at[:, :, k // 2, k // 2].add(jnp.eye(C, dtype=jnp.float32))
    p['K_oihw'] = K
    p['c_b'] = 0.05 * jax.random.normal(ks[6], (N, N, C), jnp.float32)
    p['nn_a'] = jnp.exp(-0.2 + 0.05 * jax.random.normal(ks[7], (N, N, C), jnp.float32))
    p['it_s'] = 2.0 + 0.1 * jax.random.normal(ks[8], (N, N, C), jnp.float32)
    p['it_b'] = 0.05 * jax.random.normal(ks[9], (N, N, C), jnp.float32)
    return p


def _build_param_stack(p, N, C):
    """Precompute parameter transforms and stack into one (11, N, N*C) tensor."""
    s1 = jax.nn.sigmoid(p['pi_s'])
    s2 = jax.nn.sigmoid(p['it_s'])
    planes = [
        jnp.exp(p['an_ls']), p['an_b'],          # 0,1  actnorm scale / bias
        s1, (1.0 - s1) * p['pi_b'],              # 2,3  pre-interp s / (1-s)*b
        p['pn_a'], jnp.log(p['pn_a']),           # 4,5  pre-PReLU alpha / log(alpha)
        p['c_b'],                                # 6    conv spatial bias
        p['nn_a'], jnp.log(p['nn_a']),           # 7,8  post-PReLU alpha / log(alpha)
        s2, (1.0 - s2) * p['it_b'],              # 9,10 post-interp s / (1-s)*b
    ]
    return jnp.stack(planes, axis=0).reshape(_N_PAR, N, N * C).astype(jnp.float32)


def _build_conv_weight(K_oihw, W):
    """Block-circulant (over W) conv weight: (k*W*C_in, W*C_out), bf16 for the MXU.

    out[h, w*C+co] = sum_da sum_{w',ci} x[(h+da-c0)%H, w', ci] * Big[da*W*C + w'*C+ci, w*C+co]
    reproduces centered circular cross-correlation with kernel K_oihw.
    """
    Kn = np.asarray(K_oihw, np.float32)
    C_out, C_in, k, _ = Kn.shape
    c0 = k // 2
    big = np.zeros((k, W * C_in, W * C_out), np.float32)
    for da in range(k):
        for db in range(k):
            blk = Kn[:, :, da, db].T                     # (C_in, C_out)
            for w in range(W):
                wp = (w + db - c0) % W
                big[da, wp * C_in:(wp + 1) * C_in, w * C_out:(w + 1) * C_out] = blk
    return jnp.asarray(big.reshape(k * W * C_in, W * C_out), jnp.bfloat16)


def _param_logdet(p, C, N, k):
    """Data-independent logdet terms (actnorm, interpolations, circular conv).
    Computed ONCE at init (hoisted out of the forward path).
    NOTE: valid for frozen-parameter inference only."""
    actnorm_ld = p['an_ls'].sum()
    pre_interp_ld = jnp.log(jax.nn.sigmoid(p['pi_s'])).sum()
    interp_ld = jnp.log(jax.nn.sigmoid(p['it_s'])).sum()
    # Circular conv logdet via DFT block-diagonalization ("Schur" trick).
    K_emb = jnp.zeros((C, C, N, N), jnp.float32).at[:, :, :k, :k].set(p['K_oihw'])
    K_hat = jnp.fft.fft2(K_emb)                          # (C, C, N, N) complex
    K_hat = jnp.transpose(K_hat, (2, 3, 0, 1))           # (N, N, C, C)
    Re, Im = K_hat.real, K_hat.imag
    M = jnp.concatenate([jnp.concatenate([Re, -Im], axis=-1),
                         jnp.concatenate([Im, Re], axis=-1)], axis=-2)
    _, logabs = jnp.linalg.slogdet(M)                    # real 2Cx2C: |det_c|^2
    conv_ld = 0.5 * logabs.sum()
    return float(actnorm_ld + pre_interp_ld + interp_ld + conv_ld)


# --------------------------------------------------------------------- model

class GenerativeSchurFlowPallas:
    def __init__(self, c_in, n_in, k_list, squeeze_list, seed=42):
        assert len(k_list) == len(squeeze_list)
        self.c_in, self.n_in = c_in, n_in
        self.k_list, self.squeeze_list = list(k_list), list(squeeze_list)

        key = jax.random.PRNGKey(seed)
        accum = 0
        total_param_ld = 0.0
        self.chunks = []                     # maximal runs of layers with no squeeze between
        for lid, k in enumerate(self.k_list):
            accum += self.squeeze_list[lid]
            C = c_in * 4 ** accum
            N = n_in // 2 ** accum
            assert N >= k
            key, sub = jax.random.split(key)
            p = _init_raw_params(sub, C, N, k)
            total_param_ld += _param_logdet(p, C, N, k)   # cached, not in forward
            layer = dict(C=C, N=N, k=k,
                         par_stack=_build_param_stack(p, N, C),
                         conv_w=_build_conv_weight(p['K_oihw'], N),
                         raw=p)
            if lid == 0 or self.squeeze_list[lid] > 0:
                self.chunks.append(dict(n_squeeze=self.squeeze_list[lid], layers=[]))
            self.chunks[-1]['layers'].append(layer)

        # fused per-chunk constants (one param slab + per-layer bf16 weights)
        for ch in self.chunks:
            ch['ks'] = [l['k'] for l in ch['layers']]
            ch['par_stack'] = jnp.concatenate([l['par_stack'] for l in ch['layers']], axis=0)
            ch['conv_ws'] = [l['conv_w'] for l in ch['layers']]

        self.total_param_logdet = float(total_param_ld)
        self.c_out, self.n_out = C, N
        self._transform = jax.jit(self._transform_impl)

    def _transform_impl(self, x_nchw):
        B = x_nchw.shape[0]
        n_chunks = len(self.chunks)
        # Entry: (x-0.5) + NCHW->NHWC fused with the first squeeze (one transpose).
        y = entry_transform(x_nchw, self.chunks[0]['n_squeeze'])
        logdet = jnp.full((B,), self.total_param_logdet, jnp.float32)
        log_pdf_z = None
        for ci, chunk in enumerate(self.chunks):
            if ci > 0:
                for _ in range(chunk['n_squeeze']):
                    y = squeeze_nhwc(y)
            y, prelu_ld, lp = run_chunk(y, chunk, with_logpdf=(ci == n_chunks - 1))
            logdet = logdet + prelu_ld
            if lp is not None:
                log_pdf_z = lp                # Gaussian log-pdf computed in-kernel
        z = jnp.transpose(y, (0, 3, 1, 2))    # back to NCHW like torch
        return z, logdet, log_pdf_z

    def transform_with_logdet(self, x):
        z, logdet, _ = self._transform(x)
        return z, logdet

    def dequantize(self, x, key, quantization_levels=255.0):
        return x + (1.0 / quantization_levels) * jax.random.uniform(key, x.shape, x.dtype)

    def forward(self, x, key, dequantize=True):
        if dequantize:
            x = self.dequantize(x, key)
        z, logdet, log_pdf_z = self._transform(x)
        log_pdf_x = log_pdf_z + logdet
        return z, x, logdet, log_pdf_z, log_pdf_x


# --------------------------------------------------------------------- main

if __name__ == "__main__":
    c_in, n_in = 4, 16
    k_list = [3, 3]
    squeeze_list = [1, 0]     # layer0: C=16, N=8, k=3 ; layer1: C=16, N=8, k=3 (fused)

    flow = GenerativeSchurFlowPallas(c_in, n_in, k_list, squeeze_list)

    key = jax.random.PRNGKey(0)
    kx, kd = jax.random.split(key)
    x = jax.random.uniform(kx, (2, c_in, n_in, n_in), jnp.float32)   # NCHW, like torch

    z, x_deq, logdet, log_pdf_z, log_pdf_x = flow.forward(x, kd, dequantize=True)
    jax.block_until_ready((z, x_deq, logdet, log_pdf_z, log_pdf_x))

    assert z.shape == (2, flow.c_out, flow.n_out, flow.n_out)
    assert logdet.shape == (2,) and log_pdf_z.shape == (2,) and log_pdf_x.shape == (2,)
    assert bool(jnp.all(jnp.isfinite(z))) and bool(jnp.all(jnp.isfinite(log_pdf_x)))
    print("KERNEL_OK")
</pallas_src>

<mosaic_0001>
module attributes {stable_mosaic.version = 11 : i64} {
  func.func @kernel(%arg0: i32, %arg1: memref<2x8x128xf32, #tpu.memory_space<vmem>>, %arg2: memref<22x8x128xf32, #tpu.memory_space<vmem>>, %arg3: memref<384x128xbf16, #tpu.memory_space<vmem>>, %arg4: memref<384x128xbf16, #tpu.memory_space<vmem>>, %arg5: memref<2x8x128xf32, #tpu.memory_space<vmem>>, %arg6: memref<2x1x1xf32, #tpu.memory_space<vmem>>, %arg7: memref<2x1x1xf32, #tpu.memory_space<vmem>>) attributes {dimension_semantics = [#tpu.dimension_semantics<parallel>], iteration_bounds = array<i64: 1>, scalar_prefetch = 0 : i64, scratch_operands = 0 : i64, tpu.core_type = #tpu.core_type<tc>, window_params = [{transform_indices = @transform_0, window_bounds = array<i64: 2, 8, 128>}, {pipeline_mode = #tpu.pipeline_mode<synchronous>, transform_indices = @transform_1, window_bounds = array<i64: 22, 8, 128>}, {pipeline_mode = #tpu.pipeline_mode<synchronous>, transform_indices = @transform_2, window_bounds = array<i64: 384, 128>}, {pipeline_mode = #tpu.pipeline_mode<synchronous>, transform_indices = @transform_3, window_bounds = array<i64: 384, 128>}, {transform_indices = @transform_4, window_bounds = array<i64: 2, 8, 128>}, {transform_indices = @transform_5, window_bounds = array<i64: 2, 1, 1>}, {transform_indices = @transform_6, window_bounds = array<i64: 2, 1, 1>}]} {
    %c0 = arith.constant 0 : index
    %c0_0 = arith.constant 0 : index
    %c0_1 = arith.constant 0 : index
    %0 = vector.load %arg1[%c0, %c0_0, %c0_1] : memref<2x8x128xf32, #tpu.memory_space<vmem>>, vector<2x8x128xf32>
    %cst = arith.constant 0.000000e+00 : f32
    %1 = vector.broadcast %cst : f32 to vector<2x8x128xf32>
    %c0_2 = arith.constant 0 : index
    %c0_3 = arith.constant 0 : index
    %c0_4 = arith.constant 0 : index
    %2 = vector.load %arg2[%c0_2, %c0_3, %c0_4] : memref<22x8x128xf32, #tpu.memory_space<vmem>>, vector<1x8x128xf32>
    %3 = vector.shape_cast %2 : vector<1x8x128xf32> to vector<8x128xf32>
    %4 = vector.shape_cast %3 : vector<8x128xf32> to vector<1x8x128xf32>
    %5 = vector.broadcast %4 : vector<1x8x128xf32> to vector<2x8x128xf32>
    %6 = arith.mulf %5, %0 : vector<2x8x128xf32>
    %c1 = arith.constant 1 : index
    %c0_5 = arith.constant 0 : index
    %c0_6 = arith.constant 0 : index
    %7 = vector.load %arg2[%c1, %c0_5, %c0_6] : memref<22x8x128xf32, #tpu.memory_space<vmem>>, vector<1x8x128xf32>
    %8 = vector.shape_cast %7 : vector<1x8x128xf32> to vector<8x128xf32>
    %9 = vector.shape_cast %8 : vector<8x128xf32> to vector<1x8x128xf32>
    %10 = vector.broadcast %9 : vector<1x8x128xf32> to vector<2x8x128xf32>
    %11 = arith.addf %6, %10 : vector<2x8x128xf32>
    %c2 = arith.constant 2 : index
    %c0_7 = arith.constant 0 : index
    %c0_8 = arith.constant 0 : index
    %12 = vector.load %arg2[%c2, %c0_7, %c0_8] : memref<22x8x128xf32, #tpu.memory_space<vmem>>, vector<1x8x128xf32>
    %13 = vector.shape_cast %12 : vector<1x8x128xf32> to vector<8x128xf32>
    %14 = vector.shape_cast %13 : vector<8x128xf32> to vector<1x8x128xf32>
    %15 = vector.broadcast %14 : vector<1x8x128xf32> to vector<2x8x128xf32>
    %16 = arith.mulf %15, %11 : vector<2x8x128xf32>
    %c3 = arith.constant 3 : index
    %c0_9 = arith.constant 0 : index
    %c0_10 = arith.constant 0 : index
    %17 = vector.load %arg2[%c3, %c0_9, %c0_10] : memref<22x8x128xf32, #tpu.memory_space<vmem>>, vector<1x8x128xf32>
    %18 = vector.shape_cast %17 : vector<1x8x128xf32> to vector<8x128xf32>
    %19 = vector.shape_cast %18 : vector<8x128xf32> to vector<1x8x128xf32>
    %20 = vector.broadcast %19 : vector<1x8x128xf32> to vector<2x8x128xf32>
    %21 = arith.addf %16, %20 : vector<2x8x128xf32>
    %cst_11 = arith.constant 0.000000e+00 : f32
    %22 = vector.broadcast %cst_11 : f32 to vector<2x8x128xf32>
    %23 = arith.cmpf olt, %21, %22 : vector<2x8x128xf32>
    %c5 = arith.constant 5 : index
    %c0_12 = arith.constant 0 : index
    %c0_13 = arith.constant 0 : index
    %24 = vector.load %arg2[%c5, %c0_12, %c0_13] : memref<22x8x128xf32, #tpu.memory_space<vmem>>, vector<1x8x128xf32>
    %25 = vector.shape_cast %24 : vector<1x8x128xf32> to vector<8x128xf32>
    %cst_14 = arith.constant 0.000000e+00 : f32
    %26 = vector.shape_cast %25 : vector<8x128xf32> to vector<1x8x128xf32>
    %27 = vector.broadcast %26 : vector<1x8x128xf32> to vector<2x8x128xf32>
    %28 = vector.broadcast %cst_14 : f32 to vector<2x8x128xf32>
    %29 = arith.select %23, %27, %28 : vector<2x8x128xi1>, vector<2x8x128xf32>
    %30 = arith.addf %1, %29 : vector<2x8x128xf32>
    %c4 = arith.constant 4 : index
    %c0_15 = arith.constant 0 : index
    %c0_16 = arith.constant 0 : index
    %31 = vector.load %arg2[%c4, %c0_15, %c0_16] : memref<22x8x128xf32, #tpu.memory_space<vmem>>, vector<1x8x128xf32>
    %32 = vector.shape_cast %31 : vector<1x8x128xf32> to vector<8x128xf32>
    %33 = vector.shape_cast %32 : vector<8x128xf32> to vector<1x8x128xf32>
    %34 = vector.broadcast %33 : vector<1x8x128xf32> to vector<2x8x128xf32>
    %35 = arith.mulf %34, %21 : vector<2x8x128xf32>
    %36 = arith.select %23, %35, %21 : vector<2x8x128xi1>, vector<2x8x128xf32>
    %37 = vector.extract_strided_slice %36 {offsets = [0, 7, 0], sizes = [2, 1, 128], strides = [1, 1, 1]} : vector<2x8x128xf32> to vector<2x1x128xf32>
    %38 = vector.extract_strided_slice %36 {offsets = [0, 0, 0], sizes = [2, 7, 128], strides = [1, 1, 1]} : vector<2x8x128xf32> to vector<2x7x128xf32>
    %39 = tpu.concatenate %37, %38 in 1 : vector<2x1x128xf32>, vector<2x7x128xf32> -> vector<2x8x128xf32>
    %40 = vector.extract_strided_slice %36 {offsets = [0, 1, 0], sizes = [2, 7, 128], strides = [1, 1, 1]} : vector<2x8x128xf32> to vector<2x7x128xf32>
    %41 = vector.extract_strided_slice %36 {offsets = [0, 0, 0], sizes = [2, 1, 128], strides = [1, 1, 1]} : vector<2x8x128xf32> to vector<2x1x128xf32>
    %42 = tpu.concatenate %40, %41 in 1 : vector<2x7x128xf32>, vector<2x1x128xf32> -> vector<2x8x128xf32>
    %43 = tpu.concatenate %39, %36, %42 in 2 : vector<2x8x128xf32>, vector<2x8x128xf32>, vector<2x8x128xf32> -> vector<2x8x384xf32>
    %44 = arith.truncf %43 : vector<2x8x384xf32> to vector<2x8x384xbf16>
    %45 = vector.shape_cast %44 : vector<2x8x384xbf16> to vector<16x384xbf16>
    %c0_17 = arith.constant 0 : index
    %c0_18 = arith.constant 0 : index
    %46 = vector.load %arg3[%c0_17, %c0_18] : memref<384x128xbf16, #tpu.memory_space<vmem>>, vector<384x128xbf16>
    %cst_19 = arith.constant dense<0.000000e+00> : vector<16x128xf32>
    %47 = tpu.matmul %45, %46, %cst_19 {dimension_numbers = #tpu.dot_dimension_numbers<[1], [0], [0], [1], [0, 0, 1, 1], [], []>} : vector<16x384xbf16>, vector<384x128xbf16>, vector<16x128xf32> -> vector<16x128xf32>
    %48 = vector.shape_cast %47 : vector<16x128xf32> to vector<2x8x128xf32>
    %c6 = arith.constant 6 : index
    %c0_20 = arith.constant 0 : index
    %c0_21 = arith.constant 0 : index
    %49 = vector.load %arg2[%c6, %c0_20, %c0_21] : memref<22x8x128xf32, #tpu.memory_space<vmem>>, vector<1x8x128xf32>
    %50 = vector.shape_cast %49 : vector<1x8x128xf32> to vector<8x128xf32>
    %51 = vector.shape_cast %50 : vector<8x128xf32> to vector<1x8x128xf32>
    %52 = vector.broadcast %51 : vector<1x8x128xf32> to vector<2x8x128xf32>
    %53 = arith.addf %48, %52 : vector<2x8x128xf32>
    %cst_22 = arith.constant 0.000000e+00 : f32
    %54 = vector.broadcast %cst_22 : f32 to vector<2x8x128xf32>
    %55 = arith.cmpf olt, %53, %54 : vector<2x8x128xf32>
    %c8 = arith.constant 8 : index
    %c0_23 = arith.constant 0 : index
    %c0_24 = arith.constant 0 : index
    %56 = vector.load %arg2[%c8, %c0_23, %c0_24] : memref<22x8x128xf32, #tpu.memory_space<vmem>>, vector<1x8x128xf32>
    %57 = vector.shape_cast %56 : vector<1x8x128xf32> to vector<8x128xf32>
    %cst_25 = arith.constant 0.000000e+00 : f32
    %58 = vector.shape_cast %57 : vector<8x128xf32> to vector<1x8x128xf32>
    %59 = vector.broadcast %58 : vector<1x8x128xf32> to vector<2x8x128xf32>
    %60 = vector.broadcast %cst_25 : f32 to vector<2x8x128xf32>
    %61 = arith.select %55, %59, %60 : vector<2x8x128xi1>, vector<2x8x128xf32>
    %62 = arith.addf %30, %61 : vector<2x8x128xf32>
    %c7 = arith.constant 7 : index
    %c0_26 = arith.constant 0 : index
    %c0_27 = arith.constant 0 : index
    %63 = vector.load %arg2[%c7, %c0_26, %c0_27] : memref<22x8x128xf32, #tpu.memory_space<vmem>>, vector<1x8x128xf32>
    %64 = vector.shape_cast %63 : vector<1x8x128xf32> to vector<8x128xf32>
    %65 = vector.shape_cast %64 : vector<8x128xf32> to vector<1x8x128xf32>
    %66 = vector.broadcast %65 : vector<1x8x128xf32> to vector<2x8x128xf32>
    %67 = arith.mulf %66, %53 : vector<2x8x128xf32>
    %68 = arith.select %55, %67, %53 : vector<2x8x128xi1>, vector<2x8x128xf32>
    %c9 = arith.constant 9 : index
    %c0_28 = arith.constant 0 : index
    %c0_29 = arith.constant 0 : index
    %69 = vector.load %arg2[%c9, %c0_28, %c0_29] : memref<22x8x128xf32, #tpu.memory_space<vmem>>, vector<1x8x128xf32>
    %70 = vector.shape_cast %69 : vector<1x8x128xf32> to vector<8x128xf32>
    %71 = vector.shape_cast %70 : vector<8x128xf32> to vector<1x8x128xf32>
    %72 = vector.broadcast %71 : vector<1x8x128xf32> to vector<2x8x128xf32>
    %73 = arith.mulf %72, %68 : vector<2x8x128xf32>
    %c10 = arith.constant 10 : index
    %c0_30 = arith.constant 0 : index
    %c0_31 = arith.constant 0 : index
    %74 = vector.load %arg2[%c10, %c0_30, %c0_31] : memref<22x8x128xf32, #tpu.memory_space<vmem>>, vector<1x8x128xf32>
    %75 = vector.shape_cast %74 : vector<1x8x128xf32> to vector<8x128xf32>
    %76 = vector.shape_cast %75 : vector<8x128xf32> to vector<1x8x128xf32>
    %77 = vector.broadcast %76 : vector<1x8x128xf32> to vector<2x8x128xf32>
    %78 = arith.addf %73, %77 : vector<2x8x128xf32>
    %c11 = arith.constant 11 : index
    %c0_32 = arith.constant 0 : index
    %c0_33 = arith.constant 0 : index
    %79 = vector.load %arg2[%c11, %c0_32, %c0_33] : memref<22x8x128xf32, #tpu.memory_space<vmem>>, vector<1x8x128xf32>
    %80 = vector.shape_cast %79 : vector<1x8x128xf32> to vector<8x128xf32>
    %81 = vector.shape_cast %80 : vector<8x128xf32> to vector<1x8x128xf32>
    %82 = vector.broadcast %81 : vector<1x8x128xf32> to vector<2x8x128xf32>
    %83 = arith.mulf %82, %78 : vector<2x8x128xf32>
    %c12 = arith.constant 12 : index
    %c0_34 = arith.constant 0 : index
    %c0_35 = arith.constant 0 : index
    %84 = vector.load %arg2[%c12, %c0_34, %c0_35] : memref<22x8x128xf32, #tpu.memory_space<vmem>>, vector<1x8x128xf32>
    %85 = vector.shape_cast %84 : vector<1x8x128xf32> to vector<8x128xf32>
    %86 = vector.shape_cast %85 : vector<8x128xf32> to vector<1x8x128xf32>
    %87 = vector.broadcast %86 : vector<1x8x128xf32> to vector<2x8x128xf32>
    %88 = arith.addf %83, %87 : vector<2x8x128xf32>
    %c13 = arith.constant 13 : index
    %c0_36 = arith.constant 0 : index
    %c0_37 = arith.constant 0 : index
    %89 = vector.load %arg2[%c13, %c0_36, %c0_37] : memref<22x8x128xf32, #tpu.memory_space<vmem>>, vector<1x8x128xf32>
    %90 = vector.shape_cast %89 : vector<1x8x128xf32> to vector<8x128xf32>
    %91 = vector.shape_cast %90 : vector<8x128xf32> to vector<1x8x128xf32>
    %92 = vector.broadcast %91 : vector<1x8x128xf32> to vector<2x8x128xf32>
    %93 = arith.mulf %92, %88 : vector<2x8x128xf32>
    %c14 = arith.constant 14 : index
    %c0_38 = arith.constant 0 : index
    %c0_39 = arith.constant 0 : index
    %94 = vector.load %arg2[%c14, %c0_38, %c0_39] : memref<22x8x128xf32, #tpu.memory_space<vmem>>, vector<1x8x128xf32>
    %95 = vector.shape_cast %94 : vector<1x8x128xf32> to vector<8x128xf32>
    %96 = vector.shape_cast %95 : vector<8x128xf32> to vector<1x8x128xf32>
    %97 = vector.broadcast %96 : vector<1x8x128xf32> to vector<2x8x128xf32>
    %98 = arith.addf %93, %97 : vector<2x8x128xf32>
    %cst_40 = arith.constant 0.000000e+00 : f32
    %99 = vector.broadcast %cst_40 : f32 to vector<2x8x128xf32>
    %100 = arith.cmpf olt, %98, %99 : vector<2x8x128xf32>
    %c16 = arith.constant 16 : index
    %c0_41 = arith.constant 0 : index
    %c0_42 = arith.constant 0 : index
    %101 = vector.load %arg2[%c16, %c0_41, %c0_42] : memref<22x8x128xf32, #tpu.memory_space<vmem>>, vector<1x8x128xf32>
    %102 = vector.shape_cast %101 : vector<1x8x128xf32> to vector<8x128xf32>
    %cst_43 = arith.constant 0.000000e+00 : f32
    %103 = vector.shape_cast %102 : vector<8x128xf32> to vector<1x8x128xf32>
    %104 = vector.broadcast %103 : vector<1x8x128xf32> to vector<2x8x128xf32>
    %105 = vector.broadcast %cst_43 : f32 to vector<2x8x128xf32>
    %106 = arith.select %100, %104, %105 : vector<2x8x128xi1>, vector<2x8x128xf32>
    %107 = arith.addf %62, %106 : vector<2x8x128xf32>
    %c15 = arith.constant 15 : index
    %c0_44 = arith.constant 0 : index
    %c0_45 = arith.constant 0 : index
    %108 = vector.load %arg2[%c15, %c0_44, %c0_45] : memref<22x8x128xf32, #tpu.memory_space<vmem>>, vector<1x8x128xf32>
    %109 = vector.shape_cast %108 : vector<1x8x128xf32> to vector<8x128xf32>
    %110 = vector.shape_cast %109 : vector<8x128xf32> to vector<1x8x128xf32>
    %111 = vector.broadcast %110 : vector<1x8x128xf32> to vector<2x8x128xf32>
    %112 = arith.mulf %111, %98 : vector<2x8x128xf32>
    %113 = arith.select %100, %112, %98 : vector<2x8x128xi1>, vector<2x8x128xf32>
    %114 = vector.extract_strided_slice %113 {offsets = [0, 7, 0], sizes = [2, 1, 128], strides = [1, 1, 1]} : vector<2x8x128xf32> to vector<2x1x128xf32>
    %115 = vector.extract_strided_slice %113 {offsets = [0, 0, 0], sizes = [2, 7, 128], strides = [1, 1, 1]} : vector<2x8x128xf32> to vector<2x7x128xf32>
    %116 = tpu.concatenate %114, %115 in 1 : vector<2x1x128xf32>, vector<2x7x128xf32> -> vector<2x8x128xf32>
    %117 = vector.extract_strided_slice %113 {offsets = [0, 1, 0], sizes = [2, 7, 128], strides = [1, 1, 1]} : vector<2x8x128xf32> to vector<2x7x128xf32>
    %118 = vector.extract_strided_slice %113 {offsets = [0, 0, 0], sizes = [2, 1, 128], strides = [1, 1, 1]} : vector<2x8x128xf32> to vector<2x1x128xf32>
    %119 = tpu.concatenate %117, %118 in 1 : vector<2x7x128xf32>, vector<2x1x128xf32> -> vector<2x8x128xf32>
    %120 = tpu.concatenate %116, %113, %119 in 2 : vector<2x8x128xf32>, vector<2x8x128xf32>, vector<2x8x128xf32> -> vector<2x8x384xf32>
    %121 = arith.truncf %120 : vector<2x8x384xf32> to vector<2x8x384xbf16>
    %122 = vector.shape_cast %121 : vector<2x8x384xbf16> to vector<16x384xbf16>
    %c0_46 = arith.constant 0 : index
    %c0_47 = arith.constant 0 : index
    %123 = vector.load %arg4[%c0_46, %c0_47] : memref<384x128xbf16, #tpu.memory_space<vmem>>, vector<384x128xbf16>
    %cst_48 = arith.constant dense<0.000000e+00> : vector<16x128xf32>
    %124 = tpu.matmul %122, %123, %cst_48 {dimension_numbers = #tpu.dot_dimension_numbers<[1], [0], [0], [1], [0, 0, 1, 1], [], []>} : vector<16x384xbf16>, vector<384x128xbf16>, vector<16x128xf32> -> vector<16x128xf32>
    %125 = vector.shape_cast %124 : vector<16x128xf32> to vector<2x8x128xf32>
    %c17 = arith.constant 17 : index
    %c0_49 = arith.constant 0 : index
    %c0_50 = arith.constant 0 : index
    %126 = vector.load %arg2[%c17, %c0_49, %c0_50] : memref<22x8x128xf32, #tpu.memory_space<vmem>>, vector<1x8x128xf32>
    %127 = vector.shape_cast %126 : vector<1x8x128xf32> to vector<8x128xf32>
    %128 = vector.shape_cast %127 : vector<8x128xf32> to vector<1x8x128xf32>
    %129 = vector.broadcast %128 : vector<1x8x128xf32> to vector<2x8x128xf32>
    %130 = arith.addf %125, %129 : vector<2x8x128xf32>
    %cst_51 = arith.constant 0.000000e+00 : f32
    %131 = vector.broadcast %cst_51 : f32 to vector<2x8x128xf32>
    %132 = arith.cmpf olt, %130, %131 : vector<2x8x128xf32>
    %c19 = arith.constant 19 : index
    %c0_52 = arith.constant 0 : index
    %c0_53 = arith.constant 0 : index
    %133 = vector.load %arg2[%c19, %c0_52, %c0_53] : memref<22x8x128xf32, #tpu.memory_space<vmem>>, vector<1x8x128xf32>
    %134 = vector.shape_cast %133 : vector<1x8x128xf32> to vector<8x128xf32>
    %cst_54 = arith.constant 0.000000e+00 : f32
    %135 = vector.shape_cast %134 : vector<8x128xf32> to vector<1x8x128xf32>
    %136 = vector.broadcast %135 : vector<1x8x128xf32> to vector<2x8x128xf32>
    %137 = vector.broadcast %cst_54 : f32 to vector<2x8x128xf32>
    %138 = arith.select %132, %136, %137 : vector<2x8x128xi1>, vector<2x8x128xf32>
    %139 = arith.addf %107, %138 : vector<2x8x128xf32>
    %c18 = arith.constant 18 : index
    %c0_55 = arith.constant 0 : index
    %c0_56 = arith.constant 0 : index
    %140 = vector.load %arg2[%c18, %c0_55, %c0_56] : memref<22x8x128xf32, #tpu.memory_space<vmem>>, vector<1x8x128xf32>
    %141 = vector.shape_cast %140 : vector<1x8x128xf32> to vector<8x128xf32>
    %142 = vector.shape_cast %141 : vector<8x128xf32> to vector<1x8x128xf32>
    %143 = vector.broadcast %142 : vector<1x8x128xf32> to vector<2x8x128xf32>
    %144 = arith.mulf %143, %130 : vector<2x8x128xf32>
    %145 = arith.select %132, %144, %130 : vector<2x8x128xi1>, vector<2x8x128xf32>
    %c20 = arith.constant 20 : index
    %c0_57 = arith.constant 0 : index
    %c0_58 = arith.constant 0 : index
    %146 = vector.load %arg2[%c20, %c0_57, %c0_58] : memref<22x8x128xf32, #tpu.memory_space<vmem>>, vector<1x8x128xf32>
    %147 = vector.shape_cast %146 : vector<1x8x128xf32> to vector<8x128xf32>
    %148 = vector.shape_cast %147 : vector<8x128xf32> to vector<1x8x128xf32>
    %149 = vector.broadcast %148 : vector<1x8x128xf32> to vector<2x8x128xf32>
    %150 = arith.mulf %149, %145 : vector<2x8x128xf32>
    %c21 = arith.constant 21 : index
    %c0_59 = arith.constant 0 : index
    %c0_60 = arith.constant 0 : index
    %151 = vector.load %arg2[%c21, %c0_59, %c0_60] : memref<22x8x128xf32, #tpu.memory_space<vmem>>, vector<1x8x128xf32>
    %152 = vector.shape_cast %151 : vector<1x8x128xf32> to vector<8x128xf32>
    %153 = vector.shape_cast %152 : vector<8x128xf32> to vector<1x8x128xf32>
    %154 = vector.broadcast %153 : vector<1x8x128xf32> to vector<2x8x128xf32>
    %155 = arith.addf %150, %154 : vector<2x8x128xf32>
    %c0_61 = arith.constant 0 : index
    %c0_62 = arith.constant 0 : index
    %c0_63 = arith.constant 0 : index
    %156 = vector.load %arg5[%c0_61, %c0_62, %c0_63] : memref<2x8x128xf32, #tpu.memory_space<vmem>>, vector<2x8x128xf32>
    tpu.vector_store %arg5[%c0_61, %c0_62, %c0_63], %155 {strides = array<i32>} : memref<2x8x128xf32, #tpu.memory_space<vmem>>, vector<2x8x128xf32>,
    %cst_64 = arith.constant dense<0.000000e+00> : vector<2x8xf32>
    %157 = vector.multi_reduction <add>, %139, %cst_64 [2] : vector<2x8x128xf32> to vector<2x8xf32>
    %158 = vector.shape_cast %157 : vector<2x8xf32> to vector<2x8x1xf32>
    %cst_65 = arith.constant dense<0.000000e+00> : vector<2x1xf32>
    %159 = vector.multi_reduction <add>, %158, %cst_65 [1] : vector<2x8x1xf32> to vector<2x1xf32>
    %160 = vector.shape_cast %159 : vector<2x1xf32> to vector<2x1x1xf32>
    %c0_66 = arith.constant 0 : index
    %c0_67 = arith.constant 0 : index
    %c0_68 = arith.constant 0 : index
    %161 = vector.load %arg6[%c0_66, %c0_67, %c0_68] : memref<2x1x1xf32, #tpu.memory_space<vmem>>, vector<2x1x1xf32>
    tpu.vector_store %arg6[%c0_66, %c0_67, %c0_68], %160 {strides = array<i32>} : memref<2x1x1xf32, #tpu.memory_space<vmem>>, vector<2x1x1xf32>,
    %162 = arith.mulf %155, %155 : vector<2x8x128xf32>
    %cst_69 = arith.constant dense<0.000000e+00> : vector<2x8xf32>
    %163 = vector.multi_reduction <add>, %162, %cst_69 [2] : vector<2x8x128xf32> to vector<2x8xf32>
    %164 = vector.shape_cast %163 : vector<2x8xf32> to vector<2x8x1xf32>
    %cst_70 = arith.constant dense<0.000000e+00> : vector<2x1xf32>
    %165 = vector.multi_reduction <add>, %164, %cst_70 [1] : vector<2x8x1xf32> to vector<2x1xf32>
    %166 = vector.shape_cast %165 : vector<2x1xf32> to vector<2x1x1xf32>
    %cst_71 = arith.constant 5.000000e-01 : f32
    %167 = vector.broadcast %cst_71 : f32 to vector<2x1x1xf32>
    %168 = arith.mulf %167, %166 : vector<2x1x1xf32>
    %cst_72 = arith.constant -940.993041 : f32
    %169 = vector.broadcast %cst_72 : f32 to vector<2x1x1xf32>
    %170 = arith.subf %169, %168 : vector<2x1x1xf32>
    %c0_73 = arith.constant 0 : index
    %c0_74 = arith.constant 0 : index
    %c0_75 = arith.constant 0 : index
    %171 = vector.load %arg7[%c0_73, %c0_74, %c0_75] : memref<2x1x1xf32, #tpu.memory_space<vmem>>, vector<2x1x1xf32>
    tpu.vector_store %arg7[%c0_73, %c0_74, %c0_75], %170 {strides = array<i32>} : memref<2x1x1xf32, #tpu.memory_space<vmem>>, vector<2x1x1xf32>,
    return
  }
  func.func @transform_0(%arg0: i32) -> (i32, i32, i32) {
    %c0_i32 = arith.constant 0 : i32
    %c0_i32_0 = arith.constant 0 : i32
    %c0_i32_1 = arith.constant 0 : i32
    return %arg0, %c0_i32, %c0_i32_0 : i32, i32, i32
  }
  func.func @transform_1(%arg0: i32) -> (i32, i32, i32) {
    %c0_i32 = arith.constant 0 : i32
    %c0_i32_0 = arith.constant 0 : i32
    %c0_i32_1 = arith.constant 0 : i32
    %c0_i32_2 = arith.constant 0 : i32
    return %c0_i32, %c0_i32_0, %c0_i32_1 : i32, i32, i32
  }
  func.func @transform_2(%arg0: i32) -> (i32, i32) {
    %c0_i32 = arith.constant 0 : i32
    %c0_i32_0 = arith.constant 0 : i32
    %c0_i32_1 = arith.constant 0 : i32
    return %c0_i32, %c0_i32_0 : i32, i32
  }
  func.func @transform_3(%arg0: i32) -> (i32, i32) {
    %c0_i32 = arith.constant 0 : i32
    %c0_i32_0 = arith.constant 0 : i32
    %c0_i32_1 = arith.constant 0 : i32
    return %c0_i32, %c0_i32_0 : i32, i32
  }
  func.func @transform_4(%arg0: i32) -> (i32, i32, i32) {
    %c0_i32 = arith.constant 0 : i32
    %c0_i32_0 = arith.constant 0 : i32
    %c0_i32_1 = arith.constant 0 : i32
    return %arg0, %c0_i32, %c0_i32_0 : i32, i32, i32
  }
  func.func @transform_5(%arg0: i32) -> (i32, i32, i32) {
    %c0_i32 = arith.constant 0 : i32
    %c0_i32_0 = arith.constant 0 : i32
    %c0_i32_1 = arith.constant 0 : i32
    return %arg0, %c0_i32, %c0_i32_0 : i32, i32, i32
  }
  func.func @transform_6(%arg0: i32) -> (i32, i32, i32) {
    %c0_i32 = arith.constant 0 : i32
    %c0_i32_0 = arith.constant 0 : i32
    %c0_i32_1 = arith.constant 0 : i32
    return %arg0, %c0_i32, %c0_i32_0 : i32, i32, i32
  }
}

</mosaic_0001>

<bundles_post_ra>
// kernel: _transform_impl.1
= control target key start
LH: loop header
LB: loop body
LE: loop exit
PB: predicated region body
PF: predicated region fallthrough
CT: control target
= control target key end

     0   :  { %v1050_v1 = vmov 0.0   ;;  %vm1051_vm0 = vmmov 0   ;;  %vm778_vm9 = vcmask 0   ;;  %s1365_s2 = inlined_call_operand.vmem [shape: bf16[384,128], index: 2, kind: input, shape index: {}]   ;;  %s1366_s0 = inlined_call_operand.vmem [shape: f32[2,8,128], index: 0, kind: input, shape index: {}]   ;;  %s1367_s1 = inlined_call_operand.vmem [shape: f32[22,8,128], index: 1, kind: input, shape index: {}]   ;;  %s1368_s3 = inlined_call_operand.vmem [shape: bf16[384,128], index: 3, kind: input, shape index: {}]   ;;  %s1369_s4 = inlined_call_operand.vmem [shape: f32[2,8,128], index: 4, kind: output, shape index: {0}]   ;;  %s1370_s5 = inlined_call_operand.vmem [shape: f32[2,1,1], index: 5, kind: output, shape index: {1}]   ;;  %s1371_s6 = inlined_call_operand.vmem [shape: f32[2,1,1], index: 6, kind: output, shape index: {2}]  }
   0x1   :  { %v1002_v0 = vld [vmem:[%s1365_s2 + $0x40] sm:$0xff]   ;;  %960 = vmatprep.subr.bf16.mxu1 %v1050_v1  ;;  %976 = vmatprep.mubr.msk.bf16.mxu1 %vm1051_vm0, %v1050_v1  ;;  %v1005_v4 = vld [vmem:[%s1365_s2 + $0x48] sm:$0xff]   ;;  %v1008_v7 = vld [vmem:[%s1365_s2 + $0x50] sm:$0xff]  }
   0x2   :  { %v1003_v2 = vld [vmem:[%s1365_s2] sm:$0xff]   ;;  %898 = vmatprep.subr.bf16.mxu0 %v1002_v0  ;;  %v1006_v5 = vld [vmem:[%s1365_s2 + $0x8] sm:$0xff]   ;;  %v1009_v8 = vld [vmem:[%s1365_s2 + $0x10] sm:$0xff]  }
   0x3   :  { %v1004_v3 = vld [vmem:[%s1365_s2 + $0x80] sm:$0xff]   ;;  %899 = vmatpush3.bf16.msra.mxu0 %v1003_v2  ;;  %v1007_v6 = vld [vmem:[%s1365_s2 + $0x88] sm:$0xff]   ;;  %v1010_v9 = vld [vmem:[%s1365_s2 + $0x90] sm:$0xff]  }
   0x4   :  { %961 = vmatpush3.bf16.msra.mxu1 %v1004_v3  ;;  %900 = vmatprep.subr.bf16.mxu0 %v1005_v4  ;;  %v1011_v10 = vld [vmem:[%s1365_s2 + $0x58] sm:$0xff]   ;;  %v1014_v13 = vld [vmem:[%s1365_s2 + $0x60] sm:$0xff]   ;;  %v1017_v16 = vld [vmem:[%s1365_s2 + $0x68] sm:$0xff]  }
   0x5   :  { %962 = vmatprep.subr.bf16.mxu1 %v1050_v1  ;;  %v1012_v11 = vld [vmem:[%s1365_s2 + $0x18] sm:$0xff]   ;;  %v1015_v14 = vld [vmem:[%s1365_s2 + $0x20] sm:$0xff]   ;;  %v1018_v17 = vld [vmem:[%s1365_s2 + $0x28] sm:$0xff]  }
   0x6   :  { %v1013_v12 = vld [vmem:[%s1365_s2 + $0x98] sm:$0xff]   ;;  %v1016_v15 = vld [vmem:[%s1365_s2 + $0xa0] sm:$0xff]   ;;  %v1019_v18 = vld [vmem:[%s1365_s2 + $0xa8] sm:$0xff]  }
   0x7   :  { %901 = vmatpush3.bf16.msra.mxu0 %v1006_v5  ;;  %v1020_v19 = vld [vmem:[%s1365_s2 + $0x70] sm:$0xff]   ;;  %v1023_v22 = vld [vmem:[%s1365_s2 + $0x78] sm:$0xff]   ;;  %v21_v23 = vld [vmem:[%s1366_s0] sm:$0xff] }
   0x8   :  { %963 = vmatpush3.bf16.msra.mxu1 %v1007_v6  ;;  %902 = vmatprep.subr.bf16.mxu0 %v1008_v7  ;;  %v1021_v20 = vld [vmem:[%s1365_s2 + $0x30] sm:$0xff]   ;;  %v22_v24 = vld [vmem:[%s1366_s0 + $0x8] sm:$0xff]  ;;  %v23_v25 = vld [vmem:[%s1367_s1] sm:$0xff] }
   0x9   :  { %964 = vmatprep.subr.bf16.mxu1 %v1050_v1  ;;  %v1022_v21 = vld [vmem:[%s1365_s2 + $0xb0] sm:$0xff]   ;;  %v24_v26 = vmul.f32 %v23_v25, %v21_v23  ;;  %v25_v27 = vmul.f32 %v23_v25, %v22_v24  ;;  %v817_v28 = vld [vmem:[%s1367_s1 + $0x8] sm:$0xff]  ;;  %v1024_v30 = vld [vmem:[%s1365_s2 + $0x38] sm:$0xff]  }
   0xa   :  { %v818_v29 = vld [vmem:[%s1367_s1 + $0x10] sm:$0xff]  ;;  %v1025_v33 = vld [vmem:[%s1365_s2 + $0xb8] sm:$0xff]   ;;  %v821_v37 = vld [vmem:[%s1367_s1 + $0x20] sm:$0xff] }
   0xb   :  { %903 = vmatpush3.bf16.msra.mxu0 %v1009_v8  ;;  %v28_v31 = vadd.f32 %v817_v28, %v24_v26  ;;  %v29_v32 = vadd.f32 %v817_v28, %v25_v27  ;;  %v819_v34 = vld [vmem:[%s1367_s1 + $0x18] sm:$0xff]  ;;  %v1026_v51 = vld [vmem:[%s1368_s3 + $0x40] sm:$0xff]   ;;  %v1029_v54 = vld [vmem:[%s1368_s3 + $0x48] sm:$0xff]  }
   0xc   :  { %965 = vmatpush3.bf16.msra.mxu1 %v1010_v9  ;;  %904 = vmatprep.subr.bf16.mxu0 %v1011_v10  ;;  %v1027_v52 = vld [vmem:[%s1368_s3] sm:$0xff]   ;;  %v1030_v55 = vld [vmem:[%s1368_s3 + $0x8] sm:$0xff]   ;;  %v1032_v57 = vld [vmem:[%s1368_s3 + $0x50] sm:$0xff]  }
   0xd   :  { %966 = vmatprep.subr.bf16.mxu1 %v1050_v1  ;;  %v32_v35 = vmul.f32 %v818_v29, %v28_v31  ;;  %v33_v36 = vmul.f32 %v818_v29, %v29_v32  ;;  %v1028_v53 = vld [vmem:[%s1368_s3 + $0x80] sm:$0xff]   ;;  %v1031_v56 = vld [vmem:[%s1368_s3 + $0x88] sm:$0xff]   ;;  %v1033_v58 = vld [vmem:[%s1368_s3 + $0x10] sm:$0xff]  }
   0xe   :  { %v1034_v59 = vld [vmem:[%s1368_s3 + $0x90] sm:$0xff]   ;;  %v1035_v60 = vld [vmem:[%s1368_s3 + $0x58] sm:$0xff]   ;;  %v1038_v63 = vld [vmem:[%s1368_s3 + $0x60] sm:$0xff]  }
   0xf   :  { %905 = vmatpush3.bf16.msra.mxu0 %v1012_v11  ;;  %v1190_v38 = vadd.f32 %v819_v34, %v32_v35  ;;  %v1192_v39 = vadd.f32 %v819_v34, %v33_v36  ;;  %v1036_v61 = vld [vmem:[%s1368_s3 + $0x18] sm:$0xff]   ;;  %v1039_v0 = vld [vmem:[%s1368_s3 + $0x20] sm:$0xff]   ;;  %v1041_v3 = vld [vmem:[%s1368_s3 + $0x68] sm:$0xff]  }
  0x10   :  { %967 = vmatpush3.bf16.msra.mxu1 %v1013_v12  ;;  %906 = vmatprep.subr.bf16.mxu0 %v1014_v13  ;;  %v1037_v62 = vld [vmem:[%s1368_s3 + $0x98] sm:$0xff]   ;;  %v1040_v2 = vld [vmem:[%s1368_s3 + $0xa0] sm:$0xff]   ;;  %v1042_v4 = vld [vmem:[%s1368_s3 + $0x28] sm:$0xff]  }
  0x11   :  { %968 = vmatprep.subr.bf16.mxu1 %v1050_v1  ;;  %vm38_vm1 = vcmp.lt.f32.partialorder %v1190_v38, 0.0  ;;  %vm39_vm2 = vcmp.lt.f32.partialorder %v1192_v39, 0.0  ;;  %v48_v40 = vmul.f32 %v821_v37, %v1190_v38  ;;  %v49_v41 = vmul.f32 %v821_v37, %v1192_v39  ;;  %v1043_v5 = vld [vmem:[%s1368_s3 + $0xa8] sm:$0xff]   ;;  %v1044_v6 = vld [vmem:[%s1368_s3 + $0x70] sm:$0xff]   ;;  %v1047_v9 = vld [vmem:[%s1368_s3 + $0x78] sm:$0xff]  }
  0x12   :  { %v1045_v7 = vld [vmem:[%s1368_s3 + $0x30] sm:$0xff]   ;;  %v1048_v10 = vld [vmem:[%s1368_s3 + $0x38] sm:$0xff]   ;;  %v820_v26 = vld [vmem:[%s1367_s1 + $0x28] sm:$0xff] }
  0x13   :  { %907 = vmatpush3.bf16.msra.mxu0 %v1015_v14  ;;  %v50_v42 = vsel %vm38_vm1, %v48_v40, %v1190_v38  ;;  %v51_v43 = vsel %vm39_vm2, %v49_v41, %v1192_v39  ;;  %v1046_v8 = vld [vmem:[%s1368_s3 + $0xb0] sm:$0xff]   ;;  %v1049_v11 = vld [vmem:[%s1368_s3 + $0xb8] sm:$0xff]   ;;  %v852_v28 = vld [vmem:[%s1367_s1 + $0x48] sm:$0xff] }
  0x14   :  { %969 = vmatpush3.bf16.msra.mxu1 %v1016_v15  ;;  %908 = vmatprep.subr.bf16.mxu0 %v1017_v16  ;;  %v54_v44 = vrot.slane %v50_v42, 7  ;;  %v55_v45 = vrot.slane %v51_v43, 7  ;;  %v61_v46 = vrot.slane %v50_v42, 1  ;;  %v62_v47 = vrot.slane %v51_v43, 1  ;;  %v853_v32 = vld [vmem:[%s1367_s1 + $0x50] sm:$0xff]  ;;  %v850_v34 = vld [vmem:[%s1367_s1 + $0x40] sm:$0xff] }
  0x15   :  { %970 = vmatprep.subr.bf16.mxu1 %v1050_v1  ;;  %v893_v48 = vpack.c.bf16 %v51_v43, %v50_v42  ;;  %v854_v37 = vld [vmem:[%s1367_s1 + $0x58] sm:$0xff]  ;;  %v855_v43 = vld [vmem:[%s1367_s1 + $0x60] sm:$0xff] }
  0x16   :  { %v892_v49 = vpack.c.bf16 %v55_v45, %v54_v44  ;;  %v894_v50 = vpack.c.bf16 %v62_v47, %v61_v46  ;;  %v856_v46 = vld [vmem:[%s1367_s1 + $0x68] sm:$0xff] }
  0x17   :  { %909 = vmatpush3.bf16.msra.mxu0 %v1018_v17  ;;  %316 = vmatprep.mubr.bf16.mxu0 %v893_v48 }
  0x18   :  { %971 = vmatpush3.bf16.msra.mxu1 %v1019_v18  ;;  %910 = vmatprep.subr.bf16.mxu0 %v1020_v19  ;;  %v849_v19 = vld [vmem:[%s1367_s1 + $0x30] sm:$0xff] }
  0x19   :  { %972 = vmatprep.subr.bf16.mxu1 %v1050_v1 }
  0x1b   :  { %911 = vmatpush3.bf16.msra.mxu0 %v1021_v20 }
  0x1c   :  { %973 = vmatpush3.bf16.msra.mxu1 %v1022_v21  ;;  %912 = vmatprep.subr.bf16.mxu0 %v1023_v22 }
  0x1d   :  { %974 = vmatprep.subr.bf16.mxu1 %v1050_v1 }
  0x1f   :  { %913 = vmatpush3.bf16.msra.mxu0 %v1024_v30  ;;  %v43_v30 = vsel %vm39_vm2, %v820_v26, 0.0 }
  0x20   :  { %975 = vmatpush3.bf16.msra.mxu1 %v1025_v33  ;;  %929 = vmatprep.subr.bf16.mxu0 %v1026_v51 }
  0x21   :  { %980 = vmatprep.subr.bf16.mxu1 %v1050_v1 }
  0x22   :  { %317 = vmatmul.mubr.bf16.vlgmr.msra.gmra.mrb[0].mxu0 %v892_v49  ;;  %v857_v49 = vld [vmem:[%s1367_s1 + $0x70] sm:$0xff] }
  0x23   :  { %977 = vmatmul.mubr.bf16.vlgmr.msra.gmra.mrb[0].mxu1 %v894_v50  ;;  %930 = vmatpush3.bf16.msra.mxu0 %v1027_v52  ;;  %v859_v52 = vld [vmem:[%s1367_s1 + $0x78] sm:$0xff] }
  0x24   :  { %996 = vmatprep.mubr.msk.bf16.mxu1 %vm1051_vm0, %v1050_v1  ;;  %981 = vmatpush3.bf16.msra.mxu1 %v1028_v53  ;;  %v42_v53 = vsel %vm38_vm1, %v820_v26, 0.0 }
  0x25   :  { %982 = vmatprep.subr.bf16.mxu1 %v1050_v1  ;;  %931 = vmatprep.subr.bf16.mxu0 %v1029_v54 }
  0x27   :  { %932 = vmatpush3.bf16.msra.mxu0 %v1030_v55 }
  0x28   :  { %983 = vmatpush3.bf16.msra.mxu1 %v1031_v56  ;;  %933 = vmatprep.subr.bf16.mxu0 %v1032_v57  ;;  %v858_v57 = vld [vmem:[%s1367_s1 + $0x80] sm:$0xff] }
  0x29   :  { %984 = vmatprep.subr.bf16.mxu1 %v1050_v1 }
  0x2b   :  { %934 = vmatpush3.bf16.msra.mxu0 %v1033_v58 }
  0x2c   :  { %985 = vmatpush3.bf16.msra.mxu1 %v1034_v59  ;;  %935 = vmatprep.subr.bf16.mxu0 %v1035_v60 }
  0x2d   :  { %986 = vmatprep.subr.bf16.mxu1 %v1050_v1 }
  0x2f   :  { %936 = vmatpush3.bf16.msra.mxu0 %v1036_v61 }
  0x30   :  { %987 = vmatpush3.bf16.msra.mxu1 %v1037_v62  ;;  %937 = vmatprep.subr.bf16.mxu0 %v1038_v63 }
  0x31   :  { %988 = vmatprep.subr.bf16.mxu1 %v1050_v1 }
  0x33   :  { %938 = vmatpush3.bf16.msra.mxu0 %v1039_v0 }
  0x34   :  { %989 = vmatpush3.bf16.msra.mxu1 %v1040_v2  ;;  %939 = vmatprep.subr.bf16.mxu0 %v1041_v3 }
  0x35   :  { %990 = vmatprep.subr.bf16.mxu1 %v1050_v1 }
  0x37   :  { %940 = vmatpush3.bf16.msra.mxu0 %v1042_v4 }
  0x38   :  { %991 = vmatpush3.bf16.msra.mxu1 %v1043_v5  ;;  %941 = vmatprep.subr.bf16.mxu0 %v1044_v6 }
  0x39   :  { %992 = vmatprep.subr.bf16.mxu1 %v1050_v1 }
  0x3b   :  { %942 = vmatpush3.bf16.msra.mxu0 %v1045_v7 }
  0x3c   :  { %993 = vmatpush3.bf16.msra.mxu1 %v1046_v8  ;;  %943 = vmatprep.subr.bf16.mxu0 %v1047_v9 }
  0x3d   :  { %994 = vmatprep.subr.bf16.mxu1 %v1050_v1  ;;  %v851_v1 = vld [vmem:[%s1367_s1 + $0x38] sm:$0xff] }
  0x3f   :  { %944 = vmatpush3.bf16.msra.mxu0 %v1048_v10 }
  0x40   :  { %995 = vmatpush3.bf16.msra.mxu1 %v1049_v11 }
  0xf5   :  { %v914_v12 = vpop.f32.mrb[0].mxu0 }
  0xf6   :  { %v359_v13 = vpop.f32.mrb[0].mxu1  ;;  %v915_v14 = vpop.f32.mrb[1].mxu0 }
  0xf7   :  { %v978_v15 = vpop.f32.mrb[1].mxu1  ;;  %v916_v16 = vadd.f32 %v915_v14, %v914_v12  ;;  %v917_v17 = vpop.f32.mrb[2].mxu0 }
  0xf8   :  { %v362_v18 = vpop.f32.mrb[2].mxu1  ;;  %v918_v20 = vpop.f32.mrb[3].mxu0 }
  0xf9   :  { %v979_v21 = vpop.f32.mrb[3].mxu1  ;;  %v360_v22 = vadd.f32 %v916_v16, %v359_v13  ;;  %v919_v23 = vadd.f32 %v918_v20, %v917_v17 }
  0xfb   :  { %v368_v24 = vadd.f32 %v849_v19, %v360_v22  ;;  %v363_v25 = vadd.f32 %v919_v23, %v362_v18  ;;  %v887_v18 = vld [vmem:[%s1367_s1 + $0x88] sm:$0xff]  ;;  %v889_v23 = vld [vmem:[%s1367_s1 + $0x90] sm:$0xff] }
  0xfd   :  { %vm370_vm3 = vcmp.lt.f32.partialorder %v368_v24, 0.0  ;;  %v380_v27 = vmul.f32 %v851_v1, %v368_v24  ;;  %v369_v29 = vadd.f32 %v849_v19, %v363_v25  ;;  %v888_v25 = vld [vmem:[%s1367_s1 + $0x98] sm:$0xff] }
  0xfe   :  { %v374_v54 = vsel %vm370_vm3, %v850_v34, 0.0 }
  0xff   :  { %v382_v31 = vsel %vm370_vm3, %v380_v27, %v368_v24  ;;  %vm371_vm4 = vcmp.lt.f32.partialorder %v369_v29, 0.0  ;;  %v381_v33 = vmul.f32 %v851_v1, %v369_v29  ;;  %v376_v60 = vadd.f32 %v374_v54, %v42_v53 }
 0x100   :  { %v386_v35 = vmul.f32 %v852_v28, %v382_v31  ;;  %v375_v36 = vsel %vm371_vm4, %v850_v34, 0.0 }
 0x101   :  { %v383_v39 = vsel %vm371_vm4, %v381_v33, %v369_v29  ;;  %v377_v40 = vadd.f32 %v375_v36, %v43_v30  ;;  %v891_v33 = vld [vmem:[%s1367_s1 + $0xa8] sm:$0xff] }
 0x102   :  { %v390_v41 = vadd.f32 %v853_v32, %v386_v35  ;;  %v387_v42 = vmul.f32 %v852_v28, %v383_v39  ;;  %v890_v28 = vld [vmem:[%s1367_s1 + $0xa0] sm:$0xff] }
 0x104   :  { %v394_v44 = vmul.f32 %v854_v37, %v390_v41  ;;  %v391_v45 = vadd.f32 %v853_v32, %v387_v42 }
 0x106   :  { %v395_v47 = vmul.f32 %v854_v37, %v391_v45  ;;  %v398_v48 = vadd.f32 %v855_v43, %v394_v44 }
 0x108   :  { %v399_v50 = vadd.f32 %v855_v43, %v395_v47  ;;  %v402_v51 = vmul.f32 %v856_v46, %v398_v48 }
 0x10a   :  { %v403_v55 = vmul.f32 %v856_v46, %v399_v50  ;;  %v406_v56 = vadd.f32 %v857_v49, %v402_v51 }
 0x10c   :  { %v407_v58 = vadd.f32 %v857_v49, %v403_v55  ;;  %vm408_vm5 = vcmp.lt.f32.partialorder %v406_v56, 0.0  ;;  %v418_v59 = vmul.f32 %v859_v52, %v406_v56 }
 0x10d   :  { %v412_v61 = vsel %vm408_vm5, %v858_v57, 0.0 }
 0x10e   :  { %vm409_vm6 = vcmp.lt.f32.partialorder %v407_v58, 0.0  ;;  %v419_v62 = vmul.f32 %v859_v52, %v407_v58  ;;  %v420_v63 = vsel %vm408_vm5, %v418_v59, %v406_v56  ;;  %v414_v0 = vadd.f32 %v412_v61, %v376_v60 }
 0x10f   :  { %v413_v2 = vsel %vm409_vm6, %v858_v57, 0.0  ;;  %v424_v3 = vrot.slane %v420_v63, 7  ;;  %v430_v6 = vrot.slane %v420_v63, 1 }
 0x110   :  { %v421_v38 = vsel %vm409_vm6, %v419_v62, %v407_v58  ;;  %v415_v4 = vadd.f32 %v413_v2, %v377_v40 }
 0x111   :  { %v425_v5 = vrot.slane %v421_v38, 7  ;;  %v431_v7 = vrot.slane %v421_v38, 1  ;;  %v896_v8 = vpack.c.bf16 %v421_v38, %v420_v63 }
 0x113   :  { %684 = vmatprep.mubr.bf16.mxu0 %v896_v8  ;;  %v895_v9 = vpack.c.bf16 %v425_v5, %v424_v3  ;;  %v897_v10 = vpack.c.bf16 %v431_v7, %v430_v6 }
 0x115   :  { %685 = vmatmul.mubr.bf16.vlgmr.msra.gmra.mrb[4].mxu0 %v895_v9  ;;  %997 = vmatmul.mubr.bf16.vlgmr.msra.gmra.mrb[4].mxu1 %v897_v10 }
 0x1e8   :  { %v945_v11 = vpop.f32.mrb[4].mxu0  ;;  %v727_v12 = vpop.f32.mrb[4].mxu1 }
 0x1e9   :  { %v946_v13 = vpop.f32.mrb[5].mxu0  ;;  %v998_v14 = vpop.f32.mrb[5].mxu1 }
 0x1ea   :  { %v947_v15 = vadd.f32 %v946_v13, %v945_v11  ;;  %v948_v16 = vpop.f32.mrb[6].mxu0  ;;  %v730_v17 = vpop.f32.mrb[6].mxu1 }
 0x1eb   :  { %v949_v19 = vpop.f32.mrb[7].mxu0  ;;  %v999_v20 = vpop.f32.mrb[7].mxu1 }
 0x1ec   :  { %v728_v21 = vadd.f32 %v947_v15, %v727_v12  ;;  %v950_v22 = vadd.f32 %v949_v19, %v948_v16 }
 0x1ee   :  { %v736_v1 = vadd.f32 %v887_v18, %v728_v21  ;;  %v731_v24 = vadd.f32 %v950_v22, %v730_v17 }
 0x1f0   :  { %v737_v26 = vadd.f32 %v887_v18, %v731_v24  ;;  %vm738_vm7 = vcmp.lt.f32.partialorder %v736_v1, 0.0  ;;  %v748_v27 = vmul.f32 %v889_v23, %v736_v1 }
 0x1f1   :  { %v742_v29 = vsel %vm738_vm7, %v888_v25, 0.0 }
 0x1f2   :  { %v749_v30 = vmul.f32 %v889_v23, %v737_v26  ;;  %v744_v31 = vadd.f32 %v742_v29, %v414_v0  ;;  %v750_v32 = vsel %vm738_vm7, %v748_v27, %v736_v1  ;;  %vm739_vm8 = vcmp.lt.f32.partialorder %v737_v26, 0.0 }
 0x1f3   :  { %v743_v34 = vsel %vm739_vm8, %v888_v25, 0.0  ;;  %v754_v35 = vmul.f32 %v890_v28, %v750_v32 }
 0x1f4   :  { %762 = vadd.xlane.f32.xlu1 %v744_v31  ;;  %v745_v36 = vadd.f32 %v743_v34, %v415_v4  ;;  %v751_v37 = vsel %vm739_vm8, %v749_v30, %v737_v26 }
 0x1f5   :  { %v758_v39 = vadd.f32 %v891_v33, %v754_v35  ;;  %v755_v40 = vmul.f32 %v890_v28, %v751_v37 }
 0x1f7   :  { %v781_v41 = vmul.f32 %v758_v39, %v758_v39  ;;  %760 = vst [vmem:[%s1369_s4] sm:$0xff] %v758_v39  ;;  %v759_v42 = vadd.f32 %v891_v33, %v755_v40 }
 0x1f8   :  { %764 = vadd.xlane.f32.xlu1 %v745_v36 }
 0x1f9   :  { %783 = vadd.xlane.f32.xlu0 %v781_v41  ;;  %761 = vst [vmem:[%s1369_s4 + $0x8] sm:$0xff] %v759_v42  ;;  %v782_v43 = vmul.f32 %v759_v42, %v759_v42 }
 0x1fd   :  { %785 = vadd.xlane.f32.xlu0 %v782_v43 }
 0x281   :  { %v763_v44 = vpop.xlane.xlu1 %762 }
 0x282   :  { %v766_v45 = vrot.slane %v763_v44, 4 }
 0x284   :  { %v767_v46 = vadd.f32 %v766_v45, %v763_v44 }
 0x285   :  { %v765_v47 = vpop.xlane.xlu1 %764 }
 0x286   :  { %v768_v48 = vrot.slane %v767_v46, 2  ;;  %v772_v49 = vrot.slane %v765_v47, 4  ;;  %v784_v50 = vpop.xlane.xlu0 %783 }
 0x287   :  { %v787_v51 = vrot.slane %v784_v50, 4 }
 0x288   :  { %v769_v52 = vadd.f32 %v768_v48, %v767_v46  ;;  %v773_v53 = vadd.f32 %v772_v49, %v765_v47 }
 0x289   :  { %v788_v54 = vadd.f32 %v787_v51, %v784_v50 }
 0x28a   :  { %v770_v55 = vrot.slane %v769_v52, 1  ;;  %v774_v56 = vrot.slane %v773_v53, 2  ;;  %v786_v57 = vpop.xlane.xlu0 %785 }
 0x28b   :  { %v789_v58 = vrot.slane %v788_v54, 2  ;;  %v793_v59 = vrot.slane %v786_v57, 4 }
 0x28c   :  { %v771_v60 = vadd.f32 %v770_v55, %v769_v52  ;;  %v775_v61 = vadd.f32 %v774_v56, %v773_v53 }
 0x28d   :  { %v790_v62 = vadd.f32 %v789_v58, %v788_v54  ;;  %v794_v63 = vadd.f32 %v793_v59, %v786_v57 }
 0x28e   :  { %779 = vst.msk [vmem:[%s1370_s5] sm:$0x1] %vm778_vm9, %v771_v60  ;;  %v776_v0 = vrot.slane %v775_v61, 1 }
 0x28f   :  { %v791_v2 = vrot.slane %v790_v62, 1  ;;  %v795_v38 = vrot.slane %v794_v63, 2 }
 0x290   :  { %v777_v3 = vadd.f32 %v776_v0, %v775_v61 }
 0x291   :  { %v792_v4 = vadd.f32 %v791_v2, %v790_v62  ;;  %v796_v5 = vadd.f32 %v795_v38, %v794_v63 }
 0x292   :  { %780 = vst.msk [vmem:[%s1370_s5 + $0x1] sm:$0x1] %vm778_vm9, %v777_v3 }
 0x293   :  { %v799_v6 = vmul.f32 0.5, %v792_v4  ;;  %v797_v7 = vrot.slane %v796_v5, 1 }
 0x295   :  { %v801_v8 = vsub.f32 -940.99304, %v799_v6  ;;  %v798_v9 = vadd.f32 %v797_v7, %v796_v5 }
 0x297   :  { %803 = vst.msk [vmem:[%s1371_s6] sm:$0x1] %vm778_vm9, %v801_v8  ;;  %v800_v10 = vmul.f32 0.5, %v798_v9 }
 0x299   :  { %v802_v11 = vsub.f32 -940.99304, %v800_v10 }
 0x29b   :  { %804 = vst.msk [vmem:[%s1371_s6 + $0x1] sm:$0x1] %vm778_vm9, %v802_v11 }

</bundles_post_ra>
